<compile_context>
chip_gen: v7x
topology: tpu7x:2x2x1
jax: 0.10.0
libtpu: 0.0.40
codegen_flags: <defaults>
</compile_context>

<pallas_src>
import functools

import jax
import jax.numpy as jnp
from jax.experimental import pallas as pl
from jax.experimental.pallas import tpu as pltpu

_LANE = 128


def _round_up(x, m):
    return ((x + m - 1) // m) * m


def _linear_block_kernel(seed_ref, x_ref, w_ref, b_ref, o_ref, *, p, training, tb):
    # fc: x @ W + b.  bf16 MXU inputs, f32 accumulate; epilogue in f32.
    xb = x_ref[...].astype(jnp.bfloat16)
    wb = w_ref[...].astype(jnp.bfloat16)
    y = jnp.dot(xb, wb, preferred_element_type=jnp.float32)
    y = y + b_ref[...]                      # bias broadcast over batch rows
    # activation: ReLU
    y = jnp.maximum(y, 0.0)

    # dropout
    if training and p > 0.0:
        if p >= 1.0:
            y = jnp.zeros_like(y)
        else:
            # TODO(synk): PyTorch's dropout RNG stream cannot be reproduced
            # bit-exactly; use a deterministic counter-based hash instead
            # (portable: no TPU-only PRNG primitives, runs under interpret).
            rows = jax.lax.broadcasted_iota(jnp.uint32, y.shape, 0)
            rows = rows + pl.program_id(0).astype(jnp.uint32) * jnp.uint32(tb)
            cols = jax.lax.broadcasted_iota(jnp.uint32, y.shape, 1)
            h = (rows * jnp.uint32(0x9E3779B1)) ^ (cols * jnp.uint32(0x85EBCA77))
            h = h + seed_ref[0].astype(jnp.uint32) * jnp.uint32(0x27D4EB2F)
            h = h ^ (h >> 15)
            h = h * jnp.uint32(0x2C1B3C6D)
            h = h ^ (h >> 12)
            h = h * jnp.uint32(0x297A2D39)
            h = h ^ (h >> 15)
            # keep-prob is (2^32 - threshold)/2^32 ~= 1-p (int truncation).
            thr = min(int(p * (2 ** 32)), 2 ** 32 - 1)   # clamp: avoid uint32 wrap at p~1
            keep = h >= jnp.uint32(thr)
            y = jnp.where(keep, y * (1.0 / (1.0 - p)), 0.0)

    o_ref[...] = y.astype(o_ref.dtype)


def linear_block_forward(x, w, b, *, training=False, p=0.5, seed=0, block_rows=512):
    """LinearBlock forward: relu(x @ w.T + b) -> dropout.

    x: (B, D_in) f32; w: (D_out, D_in) f32 (nn.Linear layout); b: (D_out,) f32.
    """
    B, D_in = x.shape
    D_out = w.shape[0]

    # Pad feature dims to lane multiples (lane-dense loads/stores, full MXU
    # columns) and batch to the row-tile size.  Zero padding is inert:
    # relu(0 + 0) = 0 and padded rows/cols are sliced off afterwards.
    dp_in = _round_up(D_in, _LANE)
    dp_out = _round_up(D_out, _LANE)
    b8 = _round_up(B, 8)
    tb = min(_round_up(block_rows, 8), b8)
    bp = _round_up(b8, tb)
    nb = bp // tb

    xp = jnp.pad(x, ((0, bp - B), (0, dp_in - D_in)))
    wtp = jnp.pad(w.T, ((0, dp_in - D_in), (0, dp_out - D_out)))   # (dp_in, dp_out)
    bpad = jnp.pad(b, (0, dp_out - D_out)).reshape(1, dp_out)
    seed_arr = jnp.array([int(seed)], dtype=jnp.int32)

    kernel = functools.partial(
        _linear_block_kernel, p=float(p), training=bool(training), tb=tb)

    # TODO(synk): for very large (D_in, D_out) weights (>~16 MiB f32), tile the
    # weight over D_out/D_in with an accumulator scratch to fit the 64 MiB v7x
    # VMEM budget; unnecessary at these sizes.
    out = pl.pallas_call(
        kernel,
        out_shape=jax.ShapeDtypeStruct((bp, dp_out), x.dtype),
        grid_spec=pltpu.PrefetchScalarGridSpec(
            num_scalar_prefetch=1,                       # dropout seed -> SMEM
            grid=(nb,),                                  # batch-row tiles
            in_specs=[
                pl.BlockSpec((tb, dp_in), lambda i, s: (i, 0)),      # x tile
                pl.BlockSpec((dp_in, dp_out), lambda i, s: (0, 0)),  # full W
                pl.BlockSpec((1, dp_out), lambda i, s: (0, 0)),      # bias row
            ],
            out_specs=pl.BlockSpec((tb, dp_out), lambda i, s: (i, 0)),
        ),
        compiler_params=pltpu.CompilerParams(
            dimension_semantics=("parallel",)),          # 2 TCs on v7x
    )(seed_arr, xp, wtp, bpad)

    return out[:B, :D_out]


if __name__ == "__main__":
    # Module config: LinearBlock(input_dim=32, output_dim=32, norm='none', activation='relu')
    B, D_in, D_out = 8, 32, 32

    key = jax.random.PRNGKey(0)
    kx, kw, kb = jax.random.split(key, 3)

    x = jax.random.normal(kx, (B, D_in), dtype=jnp.float32)
    # Deterministic init mimicking nn.Linear's uniform(-1/sqrt(fan_in), 1/sqrt(fan_in))
    bound = 1.0 / jnp.sqrt(jnp.float32(D_in))
    w = jax.random.uniform(kw, (D_out, D_in), minval=-bound, maxval=bound, dtype=jnp.float32)
    b = jax.random.uniform(kb, (D_out,), minval=-bound, maxval=bound, dtype=jnp.float32)

    # Eval-mode forward (dropout is identity, matching module.eval()).
    out = jax.block_until_ready(linear_block_forward(x, w, b, training=False))
    assert out.shape == (B, D_out)

    # Reference with the same bf16-matmul / f32-accumulate numerics.
    ref = jnp.maximum(
        jnp.dot(x.astype(jnp.bfloat16), w.T.astype(jnp.bfloat16),
                preferred_element_type=jnp.float32) + b, 0.0)
    assert jnp.allclose(out, ref, atol=1e-4, rtol=1e-4), "mismatch vs bf16 reference"
    # Loose check against full-f32 math too (bf16 rounding only).
    ref_f32 = jnp.maximum(x @ w.T + b, 0.0)
    assert jnp.allclose(out, ref_f32, atol=3e-2, rtol=3e-2), "mismatch vs f32 reference"

    # Train-mode forward (deterministic hash-mask dropout, p=0.5).
    out_tr = jax.block_until_ready(
        linear_block_forward(x, w, b, training=True, p=0.5, seed=123))
    assert out_tr.shape == (B, D_out)
    # Kept elements must equal 2x the eval output (1/(1-p) scaling); dropped are 0.
    kept_ok = jnp.where(out_tr != 0, jnp.abs(out_tr - 2.0 * out) < 1e-3, True)
    assert bool(jnp.all(kept_ok)), "train-mode kept values not scaled by 1/(1-p)"
    assert bool(jnp.any((out != 0) & (out_tr == 0))), "dropout dropped nothing"

    print("KERNEL_OK")
</pallas_src>

<mosaic_0001>
module attributes {stable_mosaic.version = 11 : i64} {
  func.func @_linear_block_kernel(%arg0: i32, %arg1: memref<1xi32, #tpu.memory_space<smem>>, %arg2: memref<8x128xf32, #tpu.memory_space<vmem>>, %arg3: memref<128x128xf32, #tpu.memory_space<vmem>>, %arg4: memref<1x128xf32, #tpu.memory_space<vmem>>, %arg5: memref<8x128xf32, #tpu.memory_space<vmem>>) attributes {dimension_semantics = [#tpu.dimension_semantics<parallel>], iteration_bounds = array<i64: 1>, scalar_prefetch = 1 : i64, scratch_operands = 0 : i64, tpu.core_type = #tpu.core_type<tc>, window_params = [{transform_indices = @transform_0, window_bounds = array<i64: 8, 128>}, {pipeline_mode = #tpu.pipeline_mode<synchronous>, transform_indices = @transform_1, window_bounds = array<i64: 128, 128>}, {pipeline_mode = #tpu.pipeline_mode<synchronous>, transform_indices = @transform_2, window_bounds = array<i64: 1, 128>}, {transform_indices = @transform_3, window_bounds = array<i64: 8, 128>}]} {
    %c0 = arith.constant 0 : index
    %c0_0 = arith.constant 0 : index
    %0 = vector.load %arg2[%c0, %c0_0] : memref<8x128xf32, #tpu.memory_space<vmem>>, vector<8x128xf32>
    %1 = arith.truncf %0 : vector<8x128xf32> to vector<8x128xbf16>
    %c0_1 = arith.constant 0 : index
    %c0_2 = arith.constant 0 : index
    %2 = vector.load %arg3[%c0_1, %c0_2] : memref<128x128xf32, #tpu.memory_space<vmem>>, vector<128x128xf32>
    %3 = arith.truncf %2 : vector<128x128xf32> to vector<128x128xbf16>
    %cst = arith.constant dense<0.000000e+00> : vector<8x128xf32>
    %4 = tpu.matmul %1, %3, %cst {dimension_numbers = #tpu.dot_dimension_numbers<[1], [0], [0], [1], [0, 0, 1, 1], [], []>} : vector<8x128xbf16>, vector<128x128xbf16>, vector<8x128xf32> -> vector<8x128xf32>
    %c0_3 = arith.constant 0 : index
    %c0_4 = arith.constant 0 : index
    %5 = vector.load %arg4[%c0_3, %c0_4] : memref<1x128xf32, #tpu.memory_space<vmem>>, vector<1x128xf32>
    %6 = vector.broadcast %5 : vector<1x128xf32> to vector<8x128xf32>
    %7 = arith.addf %4, %6 : vector<8x128xf32>
    %cst_5 = arith.constant 0.000000e+00 : f32
    %8 = vector.broadcast %cst_5 : f32 to vector<8x128xf32>
    %9 = arith.maximumf %7, %8 : vector<8x128xf32>
    %c0_6 = arith.constant 0 : index
    %c0_7 = arith.constant 0 : index
    %10 = vector.load %arg5[%c0_6, %c0_7] : memref<8x128xf32, #tpu.memory_space<vmem>>, vector<8x128xf32>
    tpu.vector_store %arg5[%c0_6, %c0_7], %9 {strides = array<i32>} : memref<8x128xf32, #tpu.memory_space<vmem>>, vector<8x128xf32>,
    return
  }
  func.func @transform_0(%arg0: i32, %arg1: memref<1xi32, #tpu.memory_space<smem>>) -> (i32, i32) {
    %c0_i32 = arith.constant 0 : i32
    %c0_i32_0 = arith.constant 0 : i32
    return %arg0, %c0_i32 : i32, i32
  }
  func.func @transform_1(%arg0: i32, %arg1: memref<1xi32, #tpu.memory_space<smem>>) -> (i32, i32) {
    %c0_i32 = arith.constant 0 : i32
    %c0_i32_0 = arith.constant 0 : i32
    %c0_i32_1 = arith.constant 0 : i32
    return %c0_i32, %c0_i32_0 : i32, i32
  }
  func.func @transform_2(%arg0: i32, %arg1: memref<1xi32, #tpu.memory_space<smem>>) -> (i32, i32) {
    %c0_i32 = arith.constant 0 : i32
    %c0_i32_0 = arith.constant 0 : i32
    %c0_i32_1 = arith.constant 0 : i32
    return %c0_i32, %c0_i32_0 : i32, i32
  }
  func.func @transform_3(%arg0: i32, %arg1: memref<1xi32, #tpu.memory_space<smem>>) -> (i32, i32) {
    %c0_i32 = arith.constant 0 : i32
    %c0_i32_0 = arith.constant 0 : i32
    return %arg0, %c0_i32 : i32, i32
  }
}

</mosaic_0001>

<bundles_post_ra>
// kernel: tpu_custom_call.1
= control target key start
LH: loop header
LB: loop body
LE: loop exit
PB: predicated region body
PF: predicated region fallthrough
CT: control target
= control target key end

     0   :  { %10 = vsyncpa [#allocation5], 0  ;;  %s322_s0 = inlined_call_operand.<no memory space> [shape: s32[1], index: 0, kind: input, shape index: {}]   ;;  %s323_s1 = inlined_call_operand.hbm [shape: f32[8,128], index: 1, kind: input, shape index: {}]   ;;  %s324_s2 = inlined_call_operand.hbm [shape: f32[128,128], index: 2, kind: input, shape index: {}]   ;;  %s325_s3 = inlined_call_operand.vmem [shape: f32[1,128], index: 3, kind: input, shape index: {}]   ;;  %s326_s4 = inlined_call_operand.hbm [shape: f32[8,128], index: 4, kind: output, shape index: {}]  }
   0x1   :  { %11 = vsyncpa [#allocation8], 0 }
   0x2   :  { %12 = vsyncpa [#allocation6], 0  ;;  %s244_s15 = smov [#allocation4]   ;;  %s245_s17 = smov [#allocation7]  }
   0x3   :  { %s19_s16 = sshll.u32 %s244_s15, 4  ;;  %s28_s18 = sshll.u32 %s245_s17, 4  ;;  %s20_s16 = int_to_ptr.vmem [resolvable:$true] %s19_s16  ;;  %s276_s18 = int_to_ptr.vmem [resolvable:$true] %s28_s18 }
   0x4   :  { %s172_s20 = scalar_lea.hbm %s323_s1, 128 }
   0x5   :  { %p173_p0 = scmp.ne.s32.totalorder %s323_s1, %s172_s20  ;;  %p176_p1 = scmp.lt.u32.totalorder %s172_s20, %s323_s1 }
   0x7   :  { %p178_p2 = pnand %p176_p1, %p173_p0 }
   0x9   :  { %181 = shalt.err (!%p178_p2)
}
   0xa   :  { %s182_s25 = scalar_lea.vmem %s20_s16, 128  ;;  %p187_p4 = scmp.lt.s32.totalorder %s20_s16, %s20_s16 }
   0xb   :  { %p183_p3 = scmp.ne.s32.totalorder %s20_s16, %s182_s25  ;;  %p188_p5 = scmp.lt.s32.totalorder %s182_s25, %s182_s25 }
   0xd   :  { %p189_p6 = por %p188_p5, %p187_p4 }
   0xf   :  { %p190_p7 = pnand %p189_p6, %p183_p3 }
  0x11   :  { %193 = shalt.err (!%p190_p7)
}
  0x12   :  { %22 = dma.hbm_to_vmem [thread:$0]  %s323_s1, 128, %s20_s16, [#allocation5]  }
  0x13   :  { %s194_s30 = scalar_lea.hbm %s324_s2, 2048 }
  0x14   :  { %p195_p8 = scmp.ne.s32.totalorder %s324_s2, %s194_s30  ;;  %p198_p9 = scmp.lt.u32.totalorder %s194_s30, %s324_s2 }
  0x16   :  { %p200_p10 = pnand %p198_p9, %p195_p8 }
  0x18   :  { %203 = shalt.err (!%p200_p10)
}
  0x19   :  { %s204_s9 = scalar_lea.vmem %s276_s18, 2048  ;;  %p209_p12 = scmp.lt.s32.totalorder %s276_s18, %s276_s18 }
  0x1a   :  { %p205_p11 = scmp.ne.s32.totalorder %s276_s18, %s204_s9  ;;  %p210_p13 = scmp.lt.s32.totalorder %s204_s9, %s204_s9 }
  0x1c   :  { %p211_p0 = por %p210_p13, %p209_p12 }
  0x1e   :  { %p212_p1 = pnand %p211_p0, %p205_p11 }
  0x20   :  { %215 = shalt.err (!%p212_p1)
}
  0x21   :  { %s246_s1 = smov 128   ;;  %s247_s10 = smov 8  }
  0x22   :  { %34 = dma.hbm_to_vmem [thread:$0]  %s324_s2, 2048, %s276_s18, [#allocation8], %s246_s1, %s246_s1, %s247_s10  }
  0x23   :  { %238 = dma.done.wait [#allocation5], 128  }
  0x24   :  { %239 = vsyncadd [#allocation5], 4294967168 }
  0x25   :  { %240 = dma.done.wait [#allocation8], 2048  }
  0x26   :  { %241 = vsyncadd [#allocation8], 4294965248  ;;  %v248_v0 = vmov 0.0   ;;  %vm249_vm0 = vmmov 0   ;;  %v46_v1 = vld [vmem:[#allocation7] sm:$0xff]  ;;  %v47_v2 = vld [vmem:[#allocation7 + $0x8] sm:$0xff] }
  0x27   :  { %145 = vmatprep.subr.bf16.mxu0 %v248_v0  ;;  %161 = vmatprep.mubr.msk.bf16.mxu0 %vm249_vm0, %v248_v0  ;;  %v48_v3 = vld [vmem:[#allocation7 + $0x10] sm:$0xff]  ;;  %v62_v4 = vpack.c.bf16 %v47_v2, %v46_v1  ;;  %v49_v5 = vld [vmem:[#allocation7 + $0x18] sm:$0xff]  ;;  %v50_v7 = vld [vmem:[#allocation7 + $0x20] sm:$0xff]  ;;  %s250_s14 = smov [#allocation9]  }
  0x28   :  { %v63_v6 = vpack.c.bf16 %v49_v5, %v48_v3  ;;  %v51_v8 = vld [vmem:[#allocation7 + $0x28] sm:$0xff]  ;;  %v52_v10 = vld [vmem:[#allocation7 + $0x30] sm:$0xff]  ;;  %v53_v11 = vld [vmem:[#allocation7 + $0x38] sm:$0xff]  ;;  %s125_s15 = sshll.u32 %s250_s14, 4  ;;  %s126_s15 = int_to_ptr.vmem [resolvable:$true] %s125_s15 }
  0x29   :  { %146 = vmatpush3.bf16.msra.mxu0 %v62_v4  ;;  %v64_v9 = vpack.c.bf16 %v51_v8, %v50_v7  ;;  %v65_v12 = vpack.c.bf16 %v53_v11, %v52_v10  ;;  %v54_v13 = vld [vmem:[#allocation7 + $0x40] sm:$0xff]  ;;  %v55_v14 = vld [vmem:[#allocation7 + $0x48] sm:$0xff]  ;;  %v56_v16 = vld [vmem:[#allocation7 + $0x50] sm:$0xff]  ;;  %s216_s16 = scalar_lea.vmem %s126_s15, 128  ;;  %p221_p3 = scmp.lt.s32.totalorder %s126_s15, %s126_s15 }
  0x2a   :  { %147 = vmatprep.subr.bf16.mxu0 %v248_v0  ;;  %v66_v15 = vpack.c.bf16 %v55_v14, %v54_v13  ;;  %v57_v17 = vld [vmem:[#allocation7 + $0x58] sm:$0xff]  ;;  %v58_v19 = vld [vmem:[#allocation7 + $0x60] sm:$0xff]  ;;  %v59_v20 = vld [vmem:[#allocation7 + $0x68] sm:$0xff]  ;;  %p217_p2 = scmp.ne.s32.totalorder %s126_s15, %s216_s16  ;;  %p222_p4 = scmp.lt.s32.totalorder %s216_s16, %s216_s16 }
  0x2b   :  { %v67_v18 = vpack.c.bf16 %v57_v17, %v56_v16  ;;  %v68_v21 = vpack.c.bf16 %v59_v20, %v58_v19  ;;  %v60_v22 = vld [vmem:[#allocation7 + $0x70] sm:$0xff]  ;;  %v61_v23 = vld [vmem:[#allocation7 + $0x78] sm:$0xff] }
  0x2c   :  { %v69_v24 = vpack.c.bf16 %v61_v23, %v60_v22  ;;  %v44_v25 = vld [vmem:[#allocation4] sm:$0xff]  ;;  %p223_p5 = por %p222_p4, %p221_p3 }
  0x2d   :  { %148 = vmatpush3.bf16.msra.mxu0 %v63_v6  ;;  %v45_v26 = vpack.c.bf16 %v44_v25, %v44_v25  ;;  %v135_v27 = vld [vmem:[%s325_s3] ss:$0 sm:$0xff] }
  0x2e   :  { %149 = vmatprep.subr.bf16.mxu0 %v248_v0  ;;  %p224_p6 = pnand %p223_p5, %p217_p2 }
  0x31   :  { %150 = vmatpush3.bf16.msra.mxu0 %v64_v9 }
  0x32   :  { %151 = vmatprep.subr.bf16.mxu0 %v248_v0 }
  0x35   :  { %152 = vmatpush3.bf16.msra.mxu0 %v65_v12 }
  0x36   :  { %153 = vmatprep.subr.bf16.mxu0 %v248_v0 }
  0x39   :  { %154 = vmatpush3.bf16.msra.mxu0 %v66_v15 }
  0x3a   :  { %155 = vmatprep.subr.bf16.mxu0 %v248_v0 }
  0x3d   :  { %156 = vmatpush3.bf16.msra.mxu0 %v67_v18 }
  0x3e   :  { %157 = vmatprep.subr.bf16.mxu0 %v248_v0 }
  0x41   :  { %158 = vmatpush3.bf16.msra.mxu0 %v68_v21 }
  0x42   :  { %159 = vmatprep.subr.bf16.mxu0 %v248_v0 }
  0x45   :  { %160 = vmatpush3.bf16.msra.mxu0 %v69_v24 }
  0x48   :  { %162 = vmatmul.mubr.bf16.vlgmr.msra.gmra.mrb[0].mxu0 %v45_v26 }
 0x11b   :  { %v111_v28 = vpop.f32.mrb[0].mxu0 }
 0x11c   :  { %v112_v29 = vadd.f32 %v135_v27, %v111_v28  ;;  %v163_v30 = vpop.f32.mrb[1].mxu0 }
 0x11d   :  { %v114_v31 = vpop.f32.mrb[2].mxu0 }
 0x11e   :  { %v117_v32 = vmax.f32 %v112_v29, 0.0  ;;  %v164_v33 = vpop.f32.mrb[3].mxu0 }
 0x120   :  { %118 = vst [vmem:[#allocation9] sm:$0xff] %v117_v32 }
 0x121   :  { %227 = shalt.err (!%p224_p6)
}
 0x122   :  { %s228_s3 = scalar_lea.hbm %s326_s4, 128 }
 0x123   :  { %p229_p7 = scmp.ne.s32.totalorder %s326_s4, %s228_s3  ;;  %p232_p8 = scmp.lt.u32.totalorder %s228_s3, %s326_s4 }
 0x125   :  { %p234_p9 = pnand %p232_p8, %p229_p7 }
 0x127   :  { %237 = shalt.err (!%p234_p9)
}
 0x128   :  { %128 = dma.vmem_to_hbm [thread:$0]  %s126_s15, 128, %s326_s4, [#allocation6]  }
 0x129   :  { %242 = dma.done.wait [#allocation6], 128  }
 0x12a   :  { %243 = vsyncadd [#allocation6], 4294967168 }
 0x12b   :  { %132 = vsyncpa [#allocation5], 1 }
 0x12c   :  { %133 = vsyncpa [#allocation8], 1 }
 0x12d   :  { %134 = vsyncpa [#allocation6], 1 }

</bundles_post_ra>
